<compile_context>
chip_gen: v5e
topology: v5e:2x2
jax: 0.10.0
libtpu: 0.0.40
codegen_flags: <defaults>
</compile_context>

<pallas_src>
import jax
import jax.numpy as jnp
from jax import lax
from jax.experimental import pallas as pl
from jax.experimental.pallas import tpu as pltpu


def _make_mlp_kernel(n_layers, layer_out_dims, chunk, n_chunks, tail_vpu):
    """Fused MLP kernel over one (block_rows, F) slab of x.

    Ref order: (x_ref, w1, b1, ..., wL, bL, out_ref).
      x_ref:   [block_rows, F]          (native layout; batch on sublanes)
      w_i:     [out_i, in_i]            (PyTorch Linear layout)
               -- except the last weight, which is [H_last, 1] when tail_vpu
      b_i:     [out_i, 1]
      out_ref: [n_output, block_rows]   (batch on lanes -> lane-dense store)
    """

    def kernel(*refs):
        x_ref = refs[0]
        o_ref = refs[-1]
        params = refs[1:-1]

        # Hoisted out of the chunk loop: weight loads + bias lane-broadcasts.
        ws = [params[2 * i][...] for i in range(n_layers)]
        bs = [jnp.broadcast_to(params[2 * i + 1][...].astype(jnp.float32),
                               (layer_out_dims[i], chunk))
              for i in range(n_layers)]

        def body(j, carry):
            off = pl.multiple_of(j * chunk, chunk)
            xt = x_ref[pl.ds(off, chunk), :]                       # [chunk, F]
            # Layer 1: contract the feature axis of both operands -> [H1, chunk]
            # (transposed-RHS matmul keeps the activation batch-on-lanes
            # without any wrapper-side transpose of x).
            h = lax.dot_general(ws[0], xt, (((1,), (1,)), ((), ())),
                                preferred_element_type=jnp.float32) + bs[0]
            for i in range(1, n_layers):
                h = jnp.maximum(h, 0.0)            # dropout(eval)=id, then ReLU
                if i == n_layers - 1 and tail_vpu:
                    # M=1 tail: VPU multiply + sublane reduce instead of an MXU
                    # push/pop for a single output row.  ws[i] is [H_last, 1].
                    h = jnp.sum(ws[i] * h, axis=0, keepdims=True) + bs[i]
                else:
                    h = jnp.dot(ws[i], h,
                                preferred_element_type=jnp.float32) + bs[i]
            h = jax.nn.sigmoid(h)
            o_ref[:, pl.ds(off, chunk)] = h.astype(o_ref.dtype)    # lane-dense
            return carry

        lax.fori_loop(0, n_chunks, body, 0, unroll=True)

    return kernel


def individual_net2_forward(x, weights, biases, *, block_rows=4096, chunk=512,
                            compute_dtype=None):
    """Run the fused MLP.

    x: [B, F];  weights[i]: [out_i, in_i] (PyTorch layout);
    biases[i]: [out_i, 1] (or [out_i]).  Returns [B, n_output].

    block_rows: rows of x per grid step (amortizes the ~0.35us per-step
      pipeline overhead).  VMEM is never binding: even at 8192 rows the
      double-buffered x slab is only a few MiB.
    chunk: lane width of each in-kernel matmul (<=512 so [H, chunk] f32
      intermediates stay well under the 64-vreg budget -> no spills).
    compute_dtype: e.g. jnp.bfloat16 to halve x/W HBM traffic on v6e/v7x
      (accumulation stays f32); validate with a looser tolerance.
    """
    B, F = x.shape
    n_layers = len(weights)
    layer_out_dims = [int(w.shape[0]) for w in weights]
    n_output = layer_out_dims[-1]

    biases = [jnp.asarray(b).reshape(-1, 1) for b in biases]

    if compute_dtype is not None:
        x = x.astype(compute_dtype)
        weights = [w.astype(compute_dtype) for w in weights]

    def _round_up(a, m):
        return ((a + m - 1) // m) * m

    # chunk: multiple of 128 (lane width), capped at 512 (vreg budget).
    chunk = max(128, min(int(chunk), 512))
    chunk = (chunk // 128) * 128

    # block_rows: multiple of chunk; cap so the grid keeps >= 2 steps when the
    # batch allows (v7x: lets the "parallel" axis split across the two TCs).
    block_rows = max(chunk, (int(block_rows) // chunk) * chunk)
    if B > chunk:
        block_rows = min(block_rows, _round_up(pl.cdiv(B, 2), chunk))
    n_chunks = block_rows // chunk
    n_tiles = pl.cdiv(B, block_rows)

    # Single-output tail -> VPU multiply + sublane reduce; pass the last weight
    # pre-transposed ([H_last, 1], a trivial one-off op) so the kernel needs no
    # in-loop relayout.
    tail_vpu = (n_layers >= 2 and n_output == 1)
    kernel_weights = list(weights)
    if tail_vpu:
        kernel_weights[-1] = kernel_weights[-1].T

    kernel = _make_mlp_kernel(n_layers, layer_out_dims, chunk, n_chunks,
                              tail_vpu)

    # x block spans the full F dim -> one contiguous HBM burst per block.
    in_specs = [pl.BlockSpec((block_rows, F), lambda i: (i, 0))]
    args = [x]
    for w, b in zip(kernel_weights, biases):
        # Weights/biases are a few KB: full-array blocks with a constant
        # index_map stay resident in VMEM across all grid steps.
        in_specs.append(pl.BlockSpec(w.shape, lambda i: (0, 0)))
        in_specs.append(pl.BlockSpec(b.shape, lambda i: (0, 0)))
        args.append(w)
        args.append(b)

    out_spec = pl.BlockSpec((n_output, block_rows), lambda i: (0, i))

    # Advisory cost estimate: helps XLA overlap this memory/latency-bound
    # kernel with surrounding ops.
    dims = [F] + layer_out_dims
    flops = 2 * B * sum(dims[i] * dims[i + 1] for i in range(n_layers))
    param_bytes = sum(w.size * w.dtype.itemsize + b.size * b.dtype.itemsize
                      for w, b in zip(kernel_weights, biases))
    bytes_accessed = (B * F * x.dtype.itemsize
                      + B * n_output * x.dtype.itemsize + param_bytes)

    out_t = pl.pallas_call(
        kernel,
        out_shape=jax.ShapeDtypeStruct((n_output, B), x.dtype),
        grid_spec=pl.GridSpec(
            grid=(n_tiles,),
            in_specs=in_specs,
            out_specs=out_spec,
        ),
        compiler_params=pltpu.CompilerParams(
            dimension_semantics=("parallel",)),
        cost_estimate=pl.CostEstimate(
            flops=int(flops),
            transcendentals=int(B * n_output),       # sigmoid
            bytes_accessed=int(bytes_accessed)),
    )(*args)                                          # [n_output, B]

    return out_t.T                                    # [B, n_output]


def init_params(key, n_feature, n_hidden, n_output=1):
    """Deterministic synthetic init matching torch.nn.Linear's shapes.

    weights[i]: [out_i, in_i] (PyTorch layout), biases[i]: [out_i, 1].
    """
    dims = [n_feature, *n_hidden, n_output]
    weights, biases = [], []
    for i in range(1, len(dims)):
        key, kw, kb = jax.random.split(key, 3)
        fan_in = dims[i - 1]
        bound = 1.0 / (fan_in ** 0.5)
        w = jax.random.uniform(kw, (dims[i], dims[i - 1]), jnp.float32,
                               minval=-bound, maxval=bound)
        b = jax.random.uniform(kb, (dims[i], 1), jnp.float32,
                               minval=-bound, maxval=bound)
        weights.append(w)
        biases.append(b)
    return weights, biases


def reference_forward(x, weights, biases):
    """Pure-JAX reference of IndividualNet2.forward (eval mode)."""
    h = x
    n = len(weights)
    for i, (w, b) in enumerate(zip(weights, biases)):
        h = h @ w.T + b.T
        if i < n - 1:
            h = jnp.maximum(h, 0.0)  # dropout(eval)=identity, then ReLU
        else:
            h = jax.nn.sigmoid(h)
    return h


if __name__ == "__main__":
    n_feature = 16
    n_hidden = (32, 32)
    n_output = 1
    batch = 300          # deliberately NOT a multiple of block_rows/chunk

    key = jax.random.PRNGKey(0)
    key, kx = jax.random.split(key)
    x = jax.random.normal(kx, (batch, n_feature), jnp.float32)

    weights, biases = init_params(key, n_feature, n_hidden, n_output)

    # Small demo tiling: block_rows caps itself to 256 (grid = 2 steps, so the
    # partial-last-block path and the 2-TC split are both exercised), with two
    # 128-lane chunks per step.
    out = individual_net2_forward(x, weights, biases,
                                  block_rows=512, chunk=128)
    out = jax.block_until_ready(out)

    ref = reference_forward(x, weights, biases)
    assert out.shape == (batch, n_output)
    assert jnp.allclose(out, ref, atol=1e-5, rtol=1e-5), "mismatch vs reference"

    print("KERNEL_OK")
</pallas_src>

<mosaic_0001>
module attributes {stable_mosaic.version = 11 : i64} {
  func.func @kernel(%arg0: i32, %arg1: memref<256x16xf32, #tpu.memory_space<vmem>>, %arg2: memref<32x16xf32, #tpu.memory_space<vmem>>, %arg3: memref<32x1xf32, #tpu.memory_space<vmem>>, %arg4: memref<32x32xf32, #tpu.memory_space<vmem>>, %arg5: memref<32x1xf32, #tpu.memory_space<vmem>>, %arg6: memref<32x1xf32, #tpu.memory_space<vmem>>, %arg7: memref<1x1xf32, #tpu.memory_space<vmem>>, %arg8: memref<1x256xf32, #tpu.memory_space<vmem>>) attributes {dimension_semantics = [#tpu.dimension_semantics<parallel>], iteration_bounds = array<i64: 2>, scalar_prefetch = 0 : i64, scratch_operands = 0 : i64, tpu.core_type = #tpu.core_type<tc>, window_params = [{transform_indices = @transform_0, window_bounds = array<i64: 256, 16>}, {pipeline_mode = #tpu.pipeline_mode<synchronous>, transform_indices = @transform_1, window_bounds = array<i64: 32, 16>}, {pipeline_mode = #tpu.pipeline_mode<synchronous>, transform_indices = @transform_2, window_bounds = array<i64: 32, 1>}, {pipeline_mode = #tpu.pipeline_mode<synchronous>, transform_indices = @transform_3, window_bounds = array<i64: 32, 32>}, {pipeline_mode = #tpu.pipeline_mode<synchronous>, transform_indices = @transform_4, window_bounds = array<i64: 32, 1>}, {pipeline_mode = #tpu.pipeline_mode<synchronous>, transform_indices = @transform_5, window_bounds = array<i64: 32, 1>}, {pipeline_mode = #tpu.pipeline_mode<synchronous>, transform_indices = @transform_6, window_bounds = array<i64: 1, 1>}, {transform_indices = @transform_7, window_bounds = array<i64: 1, 256>}]} {
    %c0 = arith.constant 0 : index
    %c0_0 = arith.constant 0 : index
    %0 = vector.load %arg2[%c0, %c0_0] : memref<32x16xf32, #tpu.memory_space<vmem>>, vector<32x16xf32>
    %c0_1 = arith.constant 0 : index
    %c0_2 = arith.constant 0 : index
    %1 = vector.load %arg4[%c0_1, %c0_2] : memref<32x32xf32, #tpu.memory_space<vmem>>, vector<32x32xf32>
    %c0_3 = arith.constant 0 : index
    %c0_4 = arith.constant 0 : index
    %2 = vector.load %arg6[%c0_3, %c0_4] : memref<32x1xf32, #tpu.memory_space<vmem>>, vector<32x1xf32>
    %c0_5 = arith.constant 0 : index
    %c0_6 = arith.constant 0 : index
    %3 = vector.load %arg3[%c0_5, %c0_6] : memref<32x1xf32, #tpu.memory_space<vmem>>, vector<32x1xf32>
    %4 = vector.shape_cast %3 : vector<32x1xf32> to vector<32x1xf32>
    %5 = vector.broadcast %4 : vector<32x1xf32> to vector<32x128xf32>
    %c0_7 = arith.constant 0 : index
    %c0_8 = arith.constant 0 : index
    %6 = vector.load %arg5[%c0_7, %c0_8] : memref<32x1xf32, #tpu.memory_space<vmem>>, vector<32x1xf32>
    %7 = vector.shape_cast %6 : vector<32x1xf32> to vector<32x1xf32>
    %8 = vector.broadcast %7 : vector<32x1xf32> to vector<32x128xf32>
    %c0_9 = arith.constant 0 : index
    %c0_10 = arith.constant 0 : index
    %9 = vector.load %arg7[%c0_9, %c0_10] : memref<1x1xf32, #tpu.memory_space<vmem>>, vector<1x1xf32>
    %10 = vector.shape_cast %9 : vector<1x1xf32> to vector<1x1xf32>
    %11 = vector.broadcast %10 : vector<1x1xf32> to vector<1x128xf32>
    %c0_i32 = arith.constant 0 : i32
    %c128_i32 = arith.constant 128 : i32
    %12 = arith.muli %c0_i32, %c128_i32 : i32
    %13 = tpu.assume_multiple %12, 128 : i32
    %14 = arith.index_cast %13 : i32 to index
    %c0_11 = arith.constant 0 : index
    %15 = vector.load %arg1[%14, %c0_11] : memref<256x16xf32, #tpu.memory_space<vmem>>, vector<128x16xf32>
    %cst = arith.constant dense<0.000000e+00> : vector<32x128xf32>
    %16 = tpu.matmul %0, %15, %cst {dimension_numbers = #tpu.dot_dimension_numbers<[1], [1], [0], [0], [0, 0, 1, 0], [], []>} : vector<32x16xf32>, vector<128x16xf32>, vector<32x128xf32> -> vector<32x128xf32>
    %17 = arith.addf %16, %5 : vector<32x128xf32>
    %cst_12 = arith.constant 0.000000e+00 : f32
    %18 = vector.broadcast %cst_12 : f32 to vector<32x128xf32>
    %19 = arith.maximumf %17, %18 : vector<32x128xf32>
    %cst_13 = arith.constant dense<0.000000e+00> : vector<32x128xf32>
    %20 = tpu.matmul %1, %19, %cst_13 {dimension_numbers = #tpu.dot_dimension_numbers<[1], [0], [0], [1], [0, 0, 1, 1], [], []>} : vector<32x32xf32>, vector<32x128xf32>, vector<32x128xf32> -> vector<32x128xf32>
    %21 = arith.addf %20, %8 : vector<32x128xf32>
    %cst_14 = arith.constant 0.000000e+00 : f32
    %22 = vector.broadcast %cst_14 : f32 to vector<32x128xf32>
    %23 = arith.maximumf %21, %22 : vector<32x128xf32>
    %24 = vector.broadcast %2 : vector<32x1xf32> to vector<32x128xf32>
    %25 = arith.mulf %24, %23 : vector<32x128xf32>
    %cst_15 = arith.constant dense<0.000000e+00> : vector<128xf32>
    %26 = vector.multi_reduction <add>, %25, %cst_15 [0] : vector<32x128xf32> to vector<128xf32>
    %27 = vector.shape_cast %26 : vector<128xf32> to vector<1x128xf32>
    %28 = arith.addf %27, %11 : vector<1x128xf32>
    %29 = arith.negf %28 : vector<1x128xf32>
    %30 = math.exp %29 : vector<1x128xf32>
    %cst_16 = arith.constant 1.000000e+00 : f32
    %31 = vector.broadcast %cst_16 : f32 to vector<1x128xf32>
    %32 = arith.addf %31, %30 : vector<1x128xf32>
    %33 = arith.divf %31, %32 : vector<1x128xf32>
    %c0_17 = arith.constant 0 : index
    %34 = arith.index_cast %13 : i32 to index
    %35 = vector.load %arg8[%c0_17, %34] : memref<1x256xf32, #tpu.memory_space<vmem>>, vector<1x128xf32>
    tpu.vector_store %arg8[%c0_17, %34], %33 {strides = array<i32>} : memref<1x256xf32, #tpu.memory_space<vmem>>, vector<1x128xf32>,
    %c1_i32 = arith.constant 1 : i32
    %c128_i32_18 = arith.constant 128 : i32
    %36 = arith.muli %c1_i32, %c128_i32_18 : i32
    %37 = tpu.assume_multiple %36, 128 : i32
    %38 = arith.index_cast %37 : i32 to index
    %c0_19 = arith.constant 0 : index
    %39 = vector.load %arg1[%38, %c0_19] : memref<256x16xf32, #tpu.memory_space<vmem>>, vector<128x16xf32>
    %cst_20 = arith.constant dense<0.000000e+00> : vector<32x128xf32>
    %40 = tpu.matmul %0, %39, %cst_20 {dimension_numbers = #tpu.dot_dimension_numbers<[1], [1], [0], [0], [0, 0, 1, 0], [], []>} : vector<32x16xf32>, vector<128x16xf32>, vector<32x128xf32> -> vector<32x128xf32>
    %41 = arith.addf %40, %5 : vector<32x128xf32>
    %cst_21 = arith.constant 0.000000e+00 : f32
    %42 = vector.broadcast %cst_21 : f32 to vector<32x128xf32>
    %43 = arith.maximumf %41, %42 : vector<32x128xf32>
    %cst_22 = arith.constant dense<0.000000e+00> : vector<32x128xf32>
    %44 = tpu.matmul %1, %43, %cst_22 {dimension_numbers = #tpu.dot_dimension_numbers<[1], [0], [0], [1], [0, 0, 1, 1], [], []>} : vector<32x32xf32>, vector<32x128xf32>, vector<32x128xf32> -> vector<32x128xf32>
    %45 = arith.addf %44, %8 : vector<32x128xf32>
    %cst_23 = arith.constant 0.000000e+00 : f32
    %46 = vector.broadcast %cst_23 : f32 to vector<32x128xf32>
    %47 = arith.maximumf %45, %46 : vector<32x128xf32>
    %48 = vector.broadcast %2 : vector<32x1xf32> to vector<32x128xf32>
    %49 = arith.mulf %48, %47 : vector<32x128xf32>
    %cst_24 = arith.constant dense<0.000000e+00> : vector<128xf32>
    %50 = vector.multi_reduction <add>, %49, %cst_24 [0] : vector<32x128xf32> to vector<128xf32>
    %51 = vector.shape_cast %50 : vector<128xf32> to vector<1x128xf32>
    %52 = arith.addf %51, %11 : vector<1x128xf32>
    %53 = arith.negf %52 : vector<1x128xf32>
    %54 = math.exp %53 : vector<1x128xf32>
    %cst_25 = arith.constant 1.000000e+00 : f32
    %55 = vector.broadcast %cst_25 : f32 to vector<1x128xf32>
    %56 = arith.addf %55, %54 : vector<1x128xf32>
    %57 = arith.divf %55, %56 : vector<1x128xf32>
    %c0_26 = arith.constant 0 : index
    %58 = arith.index_cast %37 : i32 to index
    %59 = vector.load %arg8[%c0_26, %58] : memref<1x256xf32, #tpu.memory_space<vmem>>, vector<1x128xf32>
    tpu.vector_store %arg8[%c0_26, %58], %57 {strides = array<i32>} : memref<1x256xf32, #tpu.memory_space<vmem>>, vector<1x128xf32>,
    %c2_i32 = arith.constant 2 : i32
    return
  }
  func.func @transform_0(%arg0: i32) -> (i32, i32) {
    %c0_i32 = arith.constant 0 : i32
    %c0_i32_0 = arith.constant 0 : i32
    return %arg0, %c0_i32 : i32, i32
  }
  func.func @transform_1(%arg0: i32) -> (i32, i32) {
    %c0_i32 = arith.constant 0 : i32
    %c0_i32_0 = arith.constant 0 : i32
    %c0_i32_1 = arith.constant 0 : i32
    return %c0_i32, %c0_i32_0 : i32, i32
  }
  func.func @transform_2(%arg0: i32) -> (i32, i32) {
    %c0_i32 = arith.constant 0 : i32
    %c0_i32_0 = arith.constant 0 : i32
    %c0_i32_1 = arith.constant 0 : i32
    return %c0_i32, %c0_i32_0 : i32, i32
  }
  func.func @transform_3(%arg0: i32) -> (i32, i32) {
    %c0_i32 = arith.constant 0 : i32
    %c0_i32_0 = arith.constant 0 : i32
    %c0_i32_1 = arith.constant 0 : i32
    return %c0_i32, %c0_i32_0 : i32, i32
  }
  func.func @transform_4(%arg0: i32) -> (i32, i32) {
    %c0_i32 = arith.constant 0 : i32
    %c0_i32_0 = arith.constant 0 : i32
    %c0_i32_1 = arith.constant 0 : i32
    return %c0_i32, %c0_i32_0 : i32, i32
  }
  func.func @transform_5(%arg0: i32) -> (i32, i32) {
    %c0_i32 = arith.constant 0 : i32
    %c0_i32_0 = arith.constant 0 : i32
    %c0_i32_1 = arith.constant 0 : i32
    return %c0_i32, %c0_i32_0 : i32, i32
  }
  func.func @transform_6(%arg0: i32) -> (i32, i32) {
    %c0_i32 = arith.constant 0 : i32
    %c0_i32_0 = arith.constant 0 : i32
    %c0_i32_1 = arith.constant 0 : i32
    return %c0_i32, %c0_i32_0 : i32, i32
  }
  func.func @transform_7(%arg0: i32) -> (i32, i32) {
    %c0_i32 = arith.constant 0 : i32
    %c0_i32_0 = arith.constant 0 : i32
    return %c0_i32, %arg0 : i32, i32
  }
}

</mosaic_0001>

<bundles_post_ra>
// kernel: tpu_custom_call.1
= control target key start
LH: loop header
LB: loop body
LE: loop exit
PB: predicated region body
PF: predicated region fallthrough
CT: control target
= control target key end

     0   :  { %s1345_s0 = inlined_call_operand.vmem [shape: f32[300,16], index: 0, kind: input, shape index: {}]   ;;  %s1346_s1 = inlined_call_operand.vmem [shape: f32[32,16], index: 1, kind: input, shape index: {}]   ;;  %s1347_s2 = inlined_call_operand.vmem [shape: f32[32,1], index: 2, kind: input, shape index: {}]   ;;  %s1348_s3 = inlined_call_operand.vmem [shape: f32[32,32], index: 3, kind: input, shape index: {}]   ;;  %s1349_s4 = inlined_call_operand.vmem [shape: f32[32,1], index: 4, kind: input, shape index: {}]   ;;  %s1350_s5 = inlined_call_operand.vmem [shape: f32[32,1], index: 5, kind: input, shape index: {}]   ;;  %s1351_s6 = inlined_call_operand.<no memory space> [shape: f32[1,1], index: 6, kind: input, shape index: {}]   ;;  %s1352_s7 = inlined_call_operand.hbm [shape: f32[1,300], index: 7, kind: output, shape index: {}]  }
   0x1   :  { %v12_v0 = vstv %s1351_s6 }
   0x2   :  { %13 = vst [vmem:[#allocation2] sm:$0x1] %v12_v0 }
   0x3   :  { %14 = vsyncpa [#allocation4], 0 }
   0x4   :  { %16 = vsyncpa [#allocation4 + $0x1], 0  ;;  %s1081_s26 = smov 0   ;;  %s1083_s27 = smov 0  }
   0x5   :  { %s1085_s28 = smov 0   ;;  %s1087_s29 = smov 0  }
   0x6 LB: > { %s1102_s6 = sadd.s32 4294967295, %s1034_s29   ;;  %s832_s30 = sadd.s32 4294967294, %s1034_s29   ;;  %s1034_s29 = sphi %s1087_s29, %s1360_s29   ;;  %s1030_s28 = sphi %s1085_s28, %s1359_s28   ;;  %s1026_s27 = sphi %s1083_s27, %s1358_s27   ;;  %s1022_s26 = sphi %s1081_s26, %s1357_s26  }
   0x7   : > { %s1106_s8 = sadd.s32 1, %s1034_s29   ;;  %s181_s9 = sadd.s32 1, %s1030_s28 }
   0x8   : > { %s178_s10 = ssub.s32 %s1034_s29, %s1106_s8  ;;  %p191_p0 = scmp.ne.s32.totalorder %s1030_s28, %s1026_s27 }
   0x9   : > { %p179_p1 = scmp.eq.s32.totalorder %s178_s10, 0  ;;  %p192_p2 = scmp.eq.s32.totalorder %s1102_s6, 1 }
   0xa   : > { %p197_p3 = scmp.ne.s32.totalorder %s1026_s27, %s1022_s26  ;;  %p198_p4 = scmp.eq.s32.totalorder %s832_s30, 1 }
   0xb   : > { %s1117_s11 = scalar_select %p179_p1, %s1030_s28, %s181_s9  }
   0xc   : > { %p1119_p5 = por %p192_p2, %p191_p0  ;;  %p1123_p6 = por %p198_p4, %p197_p3 }
   0xd   : > { %p835_p7 = scmp.ge.s32.totalorder %s1034_s29, 1  ;;  %p251_p8 = scmp.lt.s32.totalorder %s1034_s29, 3 }
   0xf   : > { %p252_p9 = pnand %p835_p7, %p251_p8 }
  0x10   : > { %s837_s14 = sshll.u32 (!%p252_p9), %s1102_s6, 5 }
  0x11   : > { %255 = sbr.rel (%p252_p9) target bundleno = 493 (0x1ed), region = 48  ;;  %p292_p10 = scmp.lt.s32.totalorder (!%p252_p9), %s837_s14, 37 }
  0x16   : > { %s1362_s14 = smov (!%p292_p10, %s837_s14), 37  ;;  %vm388_vm0 = vcmask 130048   ;;  %v320_v19 = vld [vmem:[%s1347_s2 + $0x18] sm:$0xff]  ;;  %v1036_v22 = vmov 0   ;;  %v318_v25 = vld [vmem:[%s1347_s2 + $0x8] sm:$0xff]  ;;  %v319_v26 = vld [vmem:[%s1347_s2 + $0x10] sm:$0xff] }
  0x17   : > { %s838_s15 = sshll.u32 %s1362_s14, 3  ;;  %950 = vset.pattern.permute.xlu0 %v1036_v22  ;;  %951 = vset.pattern.permute.xlu1 %v1036_v22  ;;  %v317_v31 = vld [vmem:[%s1347_s2] sm:$0xff]  ;;  %v343_v32 = vld [vmem:[%s1349_s4 + $0x10] sm:$0xff]  ;;  %v314_v37 = vld [vmem:[%s1350_s5 + $0x8] sm:$0xff]  ;;  %vm482_vm1 = vcmask 261120   ;;  %s284_s14 = sand.u32 1, %s1026_s27  }
  0x18   : > { %s1133_s18 = scalar_lea.vmem %s1345_s0, %s838_s15  ;;  %338 = vperm.xlu0 %950, %v320_v19   ;;  %952 = vset.pattern.permute.xlu2 %v1036_v22  ;;  %v344_v38 = vld [vmem:[%s1349_s4 + $0x18] sm:$0xff]  ;;  %v305_v41 = vld [vmem:[%s1346_s1] sm:$0xff]  ;;  %v315_v42 = vld [vmem:[%s1350_s5 + $0x10] sm:$0xff]  ;;  %s836_s15 = sshll.u32 %s284_s14, 1 }
  0x19   : > { %v387_v1 = vld [vmem:[%s1133_s18 + $0x78] sm:$0xff]  ;;  %v386_v3 = vld [vmem:[%s1133_s18 + $0x70] sm:$0xff]  ;;  %v385_v5 = vld [vmem:[%s1133_s18 + $0x68] sm:$0xff]  ;;  %328 = vperm.xlu1 %951, %v318_v25   ;;  %s1282_s16 = scalar_lea.vmem [#allocation3], %s836_s15  ;;  %s1292_s17 = scalar_lea.sflag [#allocation4], %s284_s14 }
  0x1a   : > { %v879_v2 = vld [vmem:[%s1133_s18 + $0xf8] sm:$0xff]  ;;  %839 = vmatpush.xpose.msk.msra.mxu0 %vm388_vm0, %v387_v1  ;;  %v878_v4 = vld [vmem:[%s1133_s18 + $0xf0] sm:$0xff]  ;;  %v877_v6 = vld [vmem:[%s1133_s18 + $0xe8] sm:$0xff]  ;;  %s907_s19 = sshll.u32 (%p1119_p5), %s1102_s6, 1 }
  0x1b   : > { %880 = vmatpush.xpose.msk.msra.mxu2 %vm388_vm0, %v879_v2  ;;  %v384_v7 = vld [vmem:[%s1133_s18 + $0x60] sm:$0xff]  ;;  %v383_v9 = vld [vmem:[%s1133_s18 + $0x58] sm:$0xff]  ;;  %v382_v11 = vld [vmem:[%s1133_s18 + $0x50] sm:$0xff]  ;;  %s761_s20 = ssub.s32 (%p1119_p5), 3, %s907_s19 }
  0x1c   : > { %v876_v8 = vld [vmem:[%s1133_s18 + $0xe0] sm:$0xff]  ;;  %v875_v10 = vld [vmem:[%s1133_s18 + $0xd8] sm:$0xff]  ;;  %v874_v12 = vld [vmem:[%s1133_s18 + $0xd0] sm:$0xff]  ;;  %p762_p11 = scmp.lt.s32.totalorder (%p1119_p5), %s761_s20, 2 }
  0x1d   : > { %v381_v13 = vld [vmem:[%s1133_s18 + $0x48] sm:$0xff]  ;;  %v380_v15 = vld [vmem:[%s1133_s18 + $0x40] sm:$0xff]  ;;  %v379_v17 = vld [vmem:[%s1133_s18 + $0x38] sm:$0xff] }
  0x1e   : > { %840 = vmatpush.xpose.msk.msra.mxu0 %vm388_vm0, %v386_v3  ;;  %v873_v14 = vld [vmem:[%s1133_s18 + $0xc8] sm:$0xff]  ;;  %v872_v16 = vld [vmem:[%s1133_s18 + $0xc0] sm:$0xff]  ;;  %v871_v18 = vld [vmem:[%s1133_s18 + $0xb8] sm:$0xff] }
  0x1f   : > { %881 = vmatpush.xpose.msk.msra.mxu2 %vm388_vm0, %v878_v4  ;;  %v378_v20 = vld [vmem:[%s1133_s18 + $0x30] sm:$0xff]  ;;  %v377_v23 = vld [vmem:[%s1133_s18 + $0x28] sm:$0xff]  ;;  %v376_v27 = vld [vmem:[%s1133_s18 + $0x20] sm:$0xff] }
  0x20   : > { %v870_v21 = vld [vmem:[%s1133_s18 + $0xb0] sm:$0xff]  ;;  %v869_v24 = vld [vmem:[%s1133_s18 + $0xa8] sm:$0xff]  ;;  %v868_v28 = vld [vmem:[%s1133_s18 + $0xa0] sm:$0xff]  ;;  %333 = vperm.xlu0 %950, %v319_v26  }
  0x21   : > { %v375_v29 = vld [vmem:[%s1133_s18 + $0x18] sm:$0xff]  ;;  %v374_v33 = vld [vmem:[%s1133_s18 + $0x10] sm:$0xff]  ;;  %323 = vperm.xlu1 %951, %v317_v31   ;;  %v373_v35 = vld [vmem:[%s1133_s18 + $0x8] sm:$0xff] }
  0x22   : > { %841 = vmatpush.xpose.msk.msra.mxu0 %vm388_vm0, %v385_v5  ;;  %v867_v30 = vld [vmem:[%s1133_s18 + $0x98] sm:$0xff]  ;;  %v866_v34 = vld [vmem:[%s1133_s18 + $0x90] sm:$0xff]  ;;  %v865_v36 = vld [vmem:[%s1133_s18 + $0x88] sm:$0xff] }
  0x23   : > { %882 = vmatpush.xpose.msk.msra.mxu2 %vm388_vm0, %v877_v6  ;;  %v372_v39 = vld [vmem:[%s1133_s18] sm:$0xff]  ;;  %v306_v44 = vld [vmem:[%s1346_s1 + $0x8] sm:$0xff]  ;;  %v307_v45 = vld [vmem:[%s1346_s1 + $0x10] sm:$0xff] }
  0x24   : > { %v864_v40 = vld [vmem:[%s1133_s18 + $0x80] sm:$0xff]  ;;  %v308_v46 = vld [vmem:[%s1346_s1 + $0x18] sm:$0xff] }
  0x25   : > { %v365_v43 = vld [vmem:[#allocation2] sm:$0x1] }
  0x26   : > { %842 = vmatpush.xpose.msk.msra.mxu0 %vm388_vm0, %v384_v7  ;;  %v341_v62 = vld [vmem:[%s1349_s4] sm:$0xff] }
  0x27   : > { %883 = vmatpush.xpose.msk.msra.mxu2 %vm388_vm0, %v876_v8  ;;  %347 = vperm.xlu2 %952, %v341_v62   ;;  %v309_v8 = vld [vmem:[%s1348_s3] sm:$0xff] }
  0x28   : > { %357 = vperm.xlu0 %950, %v343_v32  }
  0x29   : > { %362 = vperm.xlu1 %951, %v344_v38  }
  0x2a   : > { %843 = vmatpush.xpose.msk.msra.mxu0 %vm388_vm0, %v383_v9  ;;  %v342_v9 = vld [vmem:[%s1349_s4 + $0x8] sm:$0xff] }
  0x2b   : > { %884 = vmatpush.xpose.msk.msra.mxu2 %vm388_vm0, %v875_v10 }
  0x2e   : > { %844 = vmatpush.xpose.msk.msra.mxu0 %vm388_vm0, %v382_v11 }
  0x2f   : > { %885 = vmatpush.xpose.msk.msra.mxu2 %vm388_vm0, %v874_v12  ;;  %352 = vperm.xlu2 %952, %v342_v9  }
  0x30   : > { %535 = vperm.xlu0 %950, %v314_v37  }
  0x31   : > { %540 = vperm.xlu1 %951, %v315_v42  }
  0x32   : > { %845 = vmatpush.xpose.msk.msra.mxu0 %vm388_vm0, %v381_v13 }
  0x33   : > { %886 = vmatpush.xpose.msk.msra.mxu2 %vm388_vm0, %v873_v14  ;;  %v310_v14 = vld [vmem:[%s1348_s3 + $0x8] sm:$0xff] }
  0x36   : > { %846 = vmatpush.xpose.msk.msra.mxu0 %vm388_vm0, %v380_v15  ;;  %v313_v15 = vld [vmem:[%s1350_s5] sm:$0xff] }
  0x37   : > { %887 = vmatpush.xpose.msk.msra.mxu2 %vm388_vm0, %v872_v16  ;;  %530 = vperm.xlu2 %952, %v313_v15   ;;  %v311_v16 = vld [vmem:[%s1348_s3 + $0x10] sm:$0xff] }
  0x38   : > { %368 = vperm.xlu0 %950, %v365_v43  }
  0x3a   : > { %847 = vmatpush.xpose.msk.msra.mxu0 %vm388_vm0, %v379_v17  ;;  %v316_v17 = vld [vmem:[%s1350_s5 + $0x18] sm:$0xff] }
  0x3b   : > { %888 = vmatpush.xpose.msk.msra.mxu2 %vm388_vm0, %v871_v18  ;;  %v312_v18 = vld [vmem:[%s1348_s3 + $0x18] sm:$0xff] }
  0x3e   : > { %848 = vmatpush.xpose.msk.msra.mxu0 %vm388_vm0, %v378_v20 }
  0x3f   : > { %889 = vmatpush.xpose.msk.msra.mxu2 %vm388_vm0, %v870_v21  ;;  %545 = vperm.xlu2 %952, %v316_v17  }
  0x42   : > { %849 = vmatpush.xpose.msk.msra.mxu0 %vm388_vm0, %v377_v23 }
  0x43   : > { %890 = vmatpush.xpose.msk.msra.mxu2 %vm388_vm0, %v869_v24 }
  0x46   : > { %850 = vmatpush.xpose.msk.msra.mxu0 %vm388_vm0, %v376_v27 }
  0x47   : > { %891 = vmatpush.xpose.msk.msra.mxu2 %vm388_vm0, %v868_v28 }
  0x4a   : > { %851 = vmatpush.xpose.msk.msra.mxu0 %vm388_vm0, %v375_v29 }
  0x4b   : > { %892 = vmatpush.xpose.msk.msra.mxu2 %vm388_vm0, %v867_v30 }
  0x4e   : > { %852 = vmatpush.xpose.msk.msra.mxu0 %vm388_vm0, %v374_v33 }
  0x4f   : > { %893 = vmatpush.xpose.msk.msra.mxu2 %vm388_vm0, %v866_v34 }
  0x52   : > { %853 = vmatpush.xpose.msk.msra.mxu0 %vm388_vm0, %v373_v35 }
  0x53   : > { %894 = vmatpush.xpose.msk.msra.mxu2 %vm388_vm0, %v865_v36 }
  0x56   : > { %854 = vmatpush.xpose.msk.msra.mxu0 %vm388_vm0, %v372_v39 }
  0x57   : > { %895 = vmatpush.xpose.msk.msra.mxu2 %vm388_vm0, %v864_v40 }
  0x59   : > { %855 = vmatmul.msk.f32.vlgmr.msra.gmra.mxu0 %vm388_vm0, %v305_v41 }
  0x5a   : > { %896 = vmatmul.msk.f32.vlgmr.msra.gmra.mxu2 %vm388_vm0, %v305_v41 }
  0x61   : > { %856 = vmatmul.msk.f32.gmra.mxu0 %vm388_vm0, %v306_v44 }
  0x62   : > { %897 = vmatmul.msk.f32.gmra.mxu2 %vm388_vm0, %v306_v44 }
  0x69   : > { %857 = vmatmul.msk.f32.gmra.mxu0 %vm388_vm0, %v307_v45 }
  0x6a   : > { %898 = vmatmul.msk.f32.gmra.mxu2 %vm388_vm0, %v307_v45 }
  0x71   : > { %858 = vmatmul.msk.f32.gmra.mxu0 %vm388_vm0, %v308_v46 }
  0x72   : > { %899 = vmatmul.msk.f32.gmra.mxu2 %vm388_vm0, %v308_v46 }
  0x81   : > { %v348_v19 = vpop.permute.xlu2 %347 }
  0x89   : > { %v353_v21 = vpop.permute.xlu2 %352 }
  0x8a   : > { %v339_v50 = vpop.permute.xlu0 %338 }
  0x8b   : > { %v329_v53 = vpop.permute.xlu1 %328 }
  0x91   : > { %v531_v30 = vpop.permute.xlu2 %530 }
  0x92   : > { %v334_v55 = vpop.permute.xlu0 %333 }
  0x93   : > { %v324_v61 = vpop.permute.xlu1 %323 }
  0x99   : > { %v546_v45 = vpop.permute.xlu2 %545 }
  0x9a   : > { %v358_v23 = vpop.permute.xlu0 %357 }
  0x9b   : > { %v363_v25 = vpop.permute.xlu1 %362 }
  0xa2   : > { %v536_v35 = vpop.permute.xlu0 %535 }
  0xa3   : > { %v541_v38 = vpop.permute.xlu1 %540 }
  0xd6   : > { %v466_v47 = vpop.f32.mrf.mxu0 }
  0xd7   : > { %v467_v63 = vadd.f32 %v466_v47, %v324_v61 }
  0xd9   : > { %v478_v6 = vmax.f32 %v467_v63, 0.0 }
  0xdd   : > { %v668_v48 = vpop.f32.mrf.mxu2 }
  0xde   : > { %v469_v49 = vpop.f32.mrf.mxu0  ;;  %v669_v10 = vadd.f32 %v668_v48, %v324_v61 }
  0xdf   : > { %v470_v59 = vadd.f32 %v469_v49, %v329_v53 }
  0xe0   : > { %v680_v13 = vmax.f32 %v669_v10, 0.0 }
  0xe1   : > { %v479_v2 = vmax.f32 %v470_v59, 0.0 }
  0xe5   : > { %v671_v51 = vpop.f32.mrf.mxu2 }
  0xe6   : > { %v472_v52 = vpop.f32.mrf.mxu0  ;;  %v672_v5 = vadd.f32 %v671_v51, %v329_v53 }
  0xe7   : > { %v473_v57 = vadd.f32 %v472_v52, %v334_v55 }
  0xe8   : > { %v681_v12 = vmax.f32 %v672_v5, 0.0 }
  0xe9   : > { %v480_v0 = vmax.f32 %v473_v57, 0.0 }
  0xed   : > { %v674_v54 = vpop.f32.mrf.mxu2 }
  0xee   : > { %v475_v56 = vpop.f32.mrf.mxu0  ;;  %v675_v3 = vadd.f32 %v674_v54, %v334_v55 }
  0xef   : > { %v476_v58 = vadd.f32 %v475_v56, %v339_v50 }
  0xf0   : > { %v682_v11 = vmax.f32 %v675_v3, 0.0 }
  0xf1   : > { %v481_v60 = vmax.f32 %v476_v58, 0.0 }
  0xf3   : > { %507 = vmatpush.msra.mxu1 %v481_v60 }
  0xf5   : > { %v677_v1 = vpop.f32.mrf.mxu2  ;;  %508 = vmatpush.msra.mxu1 %v480_v0 }
  0xf6   : > { %v678_v4 = vadd.f32 %v677_v1, %v339_v50 }
  0xf7   : > { %509 = vmatpush.msra.mxu1 %v479_v2  ;;  %v369_v2 = vpop.permute.xlu0 %368 }
  0xf8   : > { %v683_v7 = vmax.f32 %v678_v4, 0.0 }
  0xf9   : > { %510 = vmatpush.msra.mxu1 %v478_v6  ;;  %v371_v6 = vperm.slane %v369_v2, 0 }
  0xfa   : > { %696 = vmatpush.msra.mxu3 %v683_v7  ;;  %859 = vmatmul.msk.f32.vlgmr.msra.gmra.mxu1 %vm482_vm1, %v309_v8 }
  0xfc   : > { %697 = vmatpush.msra.mxu3 %v682_v11 }
  0xfe   : > { %698 = vmatpush.msra.mxu3 %v681_v12 }
 0x100   : > { %699 = vmatpush.msra.mxu3 %v680_v13 }
 0x101   : > { %900 = vmatmul.msk.f32.vlgmr.msra.gmra.mxu3 %vm482_vm1, %v309_v8 }
 0x102   : > { %860 = vmatmul.msk.f32.gmra.mxu1 %vm482_vm1, %v310_v14 }
 0x109   : > { %901 = vmatmul.msk.f32.gmra.mxu3 %vm482_vm1, %v310_v14 }
 0x10a   : > { %861 = vmatmul.msk.f32.gmra.mxu1 %vm482_vm1, %v311_v16 }
 0x111   : > { %902 = vmatmul.msk.f32.gmra.mxu3 %vm482_vm1, %v311_v16 }
 0x112   : > { %862 = vmatmul.msk.f32.gmra.mxu1 %vm482_vm1, %v312_v18 }
 0x119   : > { %903 = vmatmul.msk.f32.gmra.mxu3 %vm482_vm1, %v312_v18 }
 0x177   : > { %v512_v20 = vpop.f32.mrf.mxu1 }
 0x178   : > { %v513_v26 = vadd.f32 %v512_v20, %v348_v19 }
 0x17a   : > { %v524_v31 = vmax.f32 %v513_v26, 0.0  ;;  %v581_v26 = vlaneseq }
 0x17c   : > { %v548_v36 = vmul.f32 %v531_v30, %v524_v31  ;;  %vm1278_vm5 = vcmp.lt.s32.totalorder %v581_v26, 128 }
 0x17f   : > { %v515_v22 = vpop.f32.mrf.mxu1 }
 0x180   : > { %v516_v27 = vadd.f32 %v515_v22, %v353_v21 }
 0x182   : > { %v525_v32 = vmax.f32 %v516_v27, 0.0 }
 0x184   : > { %v701_v24 = vpop.f32.mrf.mxu3  ;;  %v549_v37 = vmul.f32 %v536_v35, %v525_v32 }
 0x185   : > { %v702_v47 = vadd.f32 %v701_v24, %v348_v19 }
 0x186   : > { %v552_v42 = vadd.f32 %v549_v37, %v548_v36 }
 0x187   : > { %v518_v28 = vpop.f32.mrf.mxu1  ;;  %v713_v53 = vmax.f32 %v702_v47, 0.0 }
 0x188   : > { %v519_v29 = vadd.f32 %v518_v28, %v358_v23 }
 0x189   : > { %v717_v59 = vmul.f32 %v713_v53, %v531_v30 }
 0x18a   : > { %v526_v34 = vmax.f32 %v519_v29, 0.0 }
 0x18c   : > { %v704_v33 = vpop.f32.mrf.mxu3  ;;  %v550_v40 = vmul.f32 %v541_v38, %v526_v34 }
 0x18d   : > { %v705_v43 = vadd.f32 %v704_v33, %v353_v21 }
 0x18e   : > { %v553_v48 = vadd.f32 %v552_v42, %v550_v40 }
 0x18f   : > { %v521_v39 = vpop.f32.mrf.mxu1  ;;  %v714_v51 = vmax.f32 %v705_v43, 0.0 }
 0x190   : > { %v522_v41 = vadd.f32 %v521_v39, %v363_v25 }
 0x191   : > { %v718_v56 = vmul.f32 %v714_v51, %v536_v35 }
 0x192   : > { %v527_v44 = vmax.f32 %v522_v41, 0.0 }
 0x193   : > { %v721_v63 = vadd.f32 %v718_v56, %v717_v59 }
 0x194   : > { %v707_v46 = vpop.f32.mrf.mxu3  ;;  %v551_v49 = vmul.f32 %v546_v45, %v527_v44 }
 0x195   : > { %v708_v50 = vadd.f32 %v707_v46, %v358_v23 }
 0x196   : > { %v554_v52 = vadd.f32 %v553_v48, %v551_v49 }
 0x197   : > { %v715_v55 = vmax.f32 %v708_v50, 0.0 }
 0x198   : > { %v555_v54 = vrot.slane %v554_v52, 4 }
 0x199   : > { %v719_v61 = vmul.f32 %v715_v55, %v541_v38 }
 0x19a   : > { %v556_v57 = vadd.f32 %v555_v54, %v554_v52 }
 0x19b   : > { %v722_v4 = vadd.f32 %v721_v63, %v719_v61 }
 0x19c   : > { %v710_v58 = vpop.f32.mrf.mxu3  ;;  %v557_v60 = vrot.slane %v556_v57, 2 }
 0x19d   : > { %v711_v62 = vadd.f32 %v710_v58, %v363_v25 }
 0x19e   : > { %v558_v0 = vadd.f32 %v557_v60, %v556_v57 }
 0x19f   : > { %v716_v1 = vmax.f32 %v711_v62, 0.0 }
 0x1a0   : > { %v559_v3 = vrot.slane %v558_v0, 1 }
 0x1a1   : > { %v720_v5 = vmul.f32 %v716_v1, %v546_v45 }
 0x1a2   : > { %v560_v7 = vadd.f32 %v559_v3, %v558_v0 }
 0x1a3   : > { %v723_v8 = vadd.f32 %v722_v4, %v720_v5 }
 0x1a4   : > { %v561_v9 = vadd.f32 %v560_v7, %v371_v6 }
 0x1a5   : > { %v724_v10 = vrot.slane %v723_v8, 4 }
 0x1a6   : > { %v863_v11 = vmul.f32 -1.442695, %v561_v9 }
 0x1a7   : > { %v725_v12 = vadd.f32 %v724_v10, %v723_v8 }
 0x1a8   : > { %953 = vpow2.f32 %v863_v11 }
 0x1a9   : > { %v726_v13 = vrot.slane %v725_v12, 2 }
 0x1ab   : > { %v727_v14 = vadd.f32 %v726_v13, %v725_v12 }
 0x1ad   : > { %v728_v15 = vrot.slane %v727_v14, 1 }
 0x1ae   : > { %v954_v16 = vpop.eup %953 }
 0x1af   : > { %v729_v17 = vadd.f32 %v728_v15, %v727_v14  ;;  %v565_v18 = vadd.f32 1.0, %v954_v16 }
 0x1b1   : > { %v730_v19 = vadd.f32 %v729_v17, %v371_v6  ;;  %955 = vrcp.f32 %v565_v18  ;;  %v577_v25 = vand.u32 2147483648, %v565_v18  ;;  %v575_v29 = vand.u32 2147483647, %v565_v18 }
 0x1b2   : > { %vm571_vm3 = vweird.f32 %v565_v18 }
 0x1b3   : > { %v904_v20 = vmul.f32 -1.442695, %v730_v19  ;;  %v578_v31 = vor.u32 1.1754944e-38, %v577_v25  ;;  %vm576_vm6 = vcmp.eq.f32.partialorder %v575_v29, 8.507059e+37 }
 0x1b5   : > { %957 = vpow2.f32 %v904_v20 }
 0x1b7   : > { %v956_v21 = vpop.eup %955 }
 0x1b8   : > { %v567_v22 = vmul.f32 %v956_v21, %v565_v18  ;;  %vm572_vm2 = vweird.f32 %v956_v21 }
 0x1b9   : > { %vm573_vm4 = vmor %vm571_vm3, %vm572_vm2 }
 0x1ba   : > { %v568_v24 = vsub.f32 1.0, %v567_v22 }
 0x1bb   : > { %v958_v23 = vpop.eup %957 }
 0x1bc   : > { %v734_v27 = vadd.f32 1.0, %v958_v23  ;;  %v569_v28 = vmul.f32 %v956_v21, %v568_v24 }
 0x1be   : > { %959 = vrcp.f32 %v734_v27  ;;  %v570_v30 = vadd.f32 %v956_v21, %v569_v28  ;;  %v746_v38 = vand.u32 2147483648, %v734_v27  ;;  %v744_v40 = vand.u32 2147483647, %v734_v27 }
 0x1bf   : > { %vm740_vm8 = vweird.f32 %v734_v27 }
 0x1c0   : > { %v574_v33 = vsel %vm573_vm4, %v956_v21, %v570_v30  ;;  %v747_v42 = vor.u32 1.1754944e-38, %v746_v38  ;;  %vm745_vm10 = vcmp.eq.f32.partialorder %v744_v40, 8.507059e+37 }
 0x1c1   : > { %v579_v34 = vsel %vm576_vm6, %v578_v31, %v574_v33 }
 0x1c2   : > { %585 = vst.msk [vmem:[%s1282_s16] sm:$0x1] %vm1278_vm5, %v579_v34 }
 0x1c4   : > { %v960_v35 = vpop.eup %959 }
 0x1c5   : > { %v736_v36 = vmul.f32 %v960_v35, %v734_v27  ;;  %vm741_vm7 = vweird.f32 %v960_v35 }
 0x1c6   : > { %vm742_vm9 = vmor %vm740_vm8, %vm741_vm7 }
 0x1c7   : > { %v737_v37 = vsub.f32 1.0, %v736_v36 }
 0x1c9   : > { %v738_v39 = vmul.f32 %v960_v35, %v737_v37 }
 0x1cb   : > { %v739_v41 = vadd.f32 %v960_v35, %v738_v39  ;;  %759 = sbr.rel (!%p1119_p5) target bundleno = 493 (0x1ed), region = 52 }
 0x1cd   : > { %v743_v43 = vsel %vm742_vm9, %v960_v35, %v739_v41 }
 0x1ce   : > { %v748_v44 = vsel %vm745_vm10, %v747_v42, %v743_v43 }
 0x1cf   : > { %905 = vst.msk [vmem:[%s1282_s16 + $0x1] sm:$0x1] %vm1278_vm5, %v748_v44 }
 0x1d0   : > { %s1364_s20 = smov (!%p762_p11, %s761_s20), 2 }
 0x1d1   : > { %s764_s21 = ssub.s32 2, %s1364_s20 }
 0x1d2   : > { %s765_s22 = sshll.u32 %s764_s21, 4 }
 0x1d3   : > { %766 = vsyncadd %s1292_s17, %s765_s22  ;;  %p908_p12 = scmp.ne.s32.totalorder %s1364_s20, 0  ;;  %s768_s23 = scalar_lea.hbm %s1352_s7, %s907_s19 }
 0x1d4   : > { %s769_s24 = sshll.u32 %s1364_s20, 4  ;;  %s770_s6 = sshll.u32 %s1282_s16, 4  ;;  %s1307_s6 = int_to_ptr.vmem [resolvable:$true] %s770_s6 }
 0x1d5   : > { %s772_s25 = sshll.u32 %s768_s23, 4  ;;  %s961_s30 = sshra.s32 %s1307_s6, 4  ;;  %s773_s25 = int_to_ptr.hbm [resolvable:$true] %s772_s25  ;;  %s962_s30 = int_to_ptr.vmem [resolvable:$true] %s961_s30 }
 0x1d6   : > { %s963_s9 = sshrl.u32 %s769_s24, 4  ;;  %s1037_s14 = smov [#allocation3]  }
 0x1d7   : > { %s968_s10 = scalar_lea.vmem %s962_s30, %s963_s9  ;;  %s972_s15 = scalar_lea.vmem %s1037_s14, 4 }
 0x1d8   : > { %p969_p13 = scmp.ne.s32.totalorder %s962_s30, %s968_s10  ;;  %p974_p2 = scmp.lt.s32.totalorder %s972_s15, %s968_s10 }
 0x1da   : > { %p970_p0 = pnand %p969_p13, %p908_p12 }
 0x1dc   : > { %p971_p1 = pneg %p970_p0 }
 0x1de   : > { %p976_p3 = pnand %p974_p2, %p971_p1 }
 0x1e0   : > { %979 = shalt.err (!%p976_p3)
}
 0x1e1   : > { %s980_s16 = sshra.s32 %s773_s25, 4  ;;  %s991_s18 = scalar_lea.hbm %s1352_s7, 3  ;;  %s981_s16 = int_to_ptr.hbm [resolvable:$true] %s980_s16 }
 0x1e2   : > { %s987_s19 = scalar_lea.hbm %s981_s16, %s963_s9  ;;  %p992_p8 = scmp.lt.s32.totalorder %s981_s16, %s1352_s7 }
 0x1e3   : > { %p988_p4 = scmp.ne.s32.totalorder %s981_s16, %s987_s19  ;;  %p993_p9 = scmp.lt.s32.totalorder %s991_s18, %s987_s19 }
 0x1e5   : > { %p989_p5 = pnand %p988_p4, %p908_p12  ;;  %p994_p10 = por %p993_p9, %p992_p8 }
 0x1e7   : > { %p990_p7 = pneg %p989_p5 }
 0x1e9   : > { %p995_p11 = pnand %p994_p10, %p990_p7 }
 0x1eb   : > { %998 = shalt.err (!%p995_p11)
}
 0x1ec   : > { %775 = dma.vmem_to_hbm [thread:$0]  (%p908_p12), %s1307_s6, %s769_s24, %s773_s25, %s1292_s17  }
 0x1ed PF: > { %p916_p13 = scmp.ge.s32.totalorder %s1034_s29, 2  ;;  %s784_s30 = sand.u32 1, %s1022_s26  }
 0x1ee   : > { %s785_s9 = scalar_lea.sflag [#allocation4], %s784_s30 }
 0x1ef   : > { %p913_p0 = pnand %p916_p13, %p1123_p6 }
 0x1f1   : > { %p914_p1 = pneg %p913_p0 }
 0x1f3   : > { %1017 = dma.done.wait (%p914_p1), %s785_s9, 32  }
 0x1f4   : > { %1019 = vsyncadd (%p914_p1), %s785_s9, 4294967264  ;;  %p19_p2 = scmp.ge.s32.totalorder %s1106_s8, 4   ;;  %s1357_s26 = smov %s1026_s27 }
 0x1f5   : > { %s1358_s27 = smov %s1030_s28  ;;  %s1359_s28 = smov %s1117_s11 }
 0x1f6   : > { %s1360_s29 = smov %s1106_s8  ;;  %21 = sbr.rel (!%p19_p2) target bundleno = 6 (0x6), region = 85 }
 0x1fb   :  { %791 = vsyncpa [#allocation4], 1 }
 0x1fc   :  { %793 = vsyncpa [#allocation4 + $0x1], 1 }

</bundles_post_ra>
